<compile_context>
chip_gen: v6e
topology: v6e:2x2x1
jax: 0.10.0
libtpu: 0.0.40
codegen_flags: <defaults>
</compile_context>

<pallas_src>
import functools

import jax
import jax.numpy as jnp
from jax.experimental import pallas as pl
from jax.experimental.pallas import tpu as pltpu

LANE = 128      # feature-dim padding (use 256 on v6e/v7x if c_hidden > 128)
NODE_PAD = 128  # node-dim padding so Ahat is lane-dense


# ----------------------------- Pallas kernel ------------------------------ #

def _gcn_fused_kernel(ahat_ref, x_ref, w_ref, b_ref, o_ref, *, num_layers):
    """Fused GCN forward: all layers in one kernel, H kept on-chip.

    ahat_ref : bf16 [Np, Np]      normalized adjacency (zero-padded)
    x_ref    : bf16 [Np, Fp]      node features (zero-padded)
    w_ref    : bf16 [L, Fp, Fp]   stacked (zero-padded) layer weights
    b_ref    : f32  [L, Fp]       stacked (zero-padded) layer biases
    o_ref    : bf16 [Np, Fp]      final layer output (rows/cols sliced outside)
    """
    ahat = ahat_ref[...]
    h = x_ref[...]
    for li in range(num_layers):                      # static unroll (L == 2)
        # Ahat @ (H @ W): bf16 operands into the MXU, f32 accumulation.
        z = jnp.dot(h, w_ref[li], preferred_element_type=jnp.float32)
        hf = jnp.dot(ahat, z.astype(jnp.bfloat16),
                     preferred_element_type=jnp.float32)
        hf = hf + b_ref[li:li + 1, :]                 # f32 bias, broadcast over nodes
        if li < num_layers - 1:
            hf = jnp.maximum(hf, 0.0)                 # ReLU; Dropout == identity (eval)
            h = hf.astype(jnp.bfloat16)               # bf16 back into the MXU
        else:
            o_ref[...] = hf.astype(o_ref.dtype)


@functools.partial(jax.jit, static_argnames=("num_layers",))
def gcn_fused_forward(ahat_p, x_p, w_stack, b_stack, *, num_layers):
    """Launch the fused kernel on pre-padded inputs. Hot path — no prep work."""
    n_pad, f_pad = x_p.shape
    kernel = functools.partial(_gcn_fused_kernel, num_layers=num_layers)
    return pl.pallas_call(
        kernel,
        out_shape=jax.ShapeDtypeStruct((n_pad, f_pad), jnp.bfloat16),
        in_specs=[pl.BlockSpec(memory_space=pltpu.MemorySpace.VMEM)] * 4,
        out_specs=pl.BlockSpec(memory_space=pltpu.MemorySpace.VMEM),
        compiler_params=pltpu.CompilerParams(
            vmem_limit_bytes=16 * 1024 * 1024),       # ~200 KB actually used
    )(ahat_p, x_p, w_stack, b_stack)


# ------------------------------ JAX glue ----------------------------------- #

def _round_up(v, m):
    return ((v + m - 1) // m) * m


def gcn_normalized_adjacency(edge_index, num_nodes):
    """Dense PyG gcn_norm adjacency with self-loops.

    edge_index: int32 [2, E] = [source_row, target_col].
    Duplicate edges accumulate weight, matching PyG's scatter-sum message
    passing on an uncoalesced edge_index.
    """
    row, col = edge_index[0], edge_index[1]
    loops = jnp.arange(num_nodes, dtype=edge_index.dtype)
    row = jnp.concatenate([row, loops])
    col = jnp.concatenate([col, loops])
    a = jnp.zeros((num_nodes, num_nodes), jnp.float32).at[col, row].add(1.0)
    deg = a.sum(axis=1)
    dinv = jnp.where(deg > 0, jax.lax.rsqrt(deg), 0.0)
    return dinv[:, None] * a * dinv[None, :]


def init_gnn_params(key, c_in, c_hidden, c_out, num_layers=2):
    """Glorot-ish init matching GCNConv(in, out) shapes. b is (c_out,)."""
    params = []
    dims = [c_in] + [c_hidden] * (num_layers - 1) + [c_out]
    for li in range(num_layers):
        key, wk = jax.random.split(key)
        fan_in, fan_out = dims[li], dims[li + 1]
        scale = jnp.sqrt(6.0 / (fan_in + fan_out))
        w = jax.random.uniform(wk, (fan_in, fan_out), jnp.float32, -scale, scale)
        b = jnp.zeros((fan_out,), jnp.float32)
        params.append((w, b))
    return params


def prepare_gnn_inputs(x, edge_index, params):
    """One-time prep (per graph + parameter set): build Ahat, pad, stack, cast.

    Hoisted out of the forward path — the XLA scatter building the dense Ahat
    and the padding/stacking dominate wall time if done per call.
    """
    n, c_in = x.shape
    dims = [c_in] + [w.shape[1] for (w, _) in params]
    f_pad = _round_up(max(dims), LANE)
    n_pad = _round_up(n, NODE_PAD)
    c_out = dims[-1]

    ahat = gcn_normalized_adjacency(edge_index, n)
    # Padded rows/cols of Ahat and padded rows of X are ZERO so phantom nodes
    # cannot leak into real rows through the aggregation matmul.
    ahat_p = jnp.zeros((n_pad, n_pad), jnp.bfloat16).at[:n, :n].set(
        ahat.astype(jnp.bfloat16))
    x_p = jnp.zeros((n_pad, f_pad), jnp.bfloat16).at[:n, :c_in].set(
        x.astype(jnp.bfloat16))

    w_stack = jnp.stack([
        jnp.zeros((f_pad, f_pad), jnp.bfloat16)
        .at[:w.shape[0], :w.shape[1]].set(w.astype(jnp.bfloat16))
        for (w, _) in params])
    b_stack = jnp.stack([
        jnp.zeros((f_pad,), jnp.float32).at[:b.shape[0]].set(b)
        for (_, b) in params])

    return ahat_p, x_p, w_stack, b_stack, (n, c_out)


def gnn_model_forward(x, edge_index, params):
    """Module-equivalent convenience wrapper (eval mode: Dropout == identity).

    For repeated inference call prepare_gnn_inputs() once and reuse the
    prepared tensors with gcn_fused_forward() directly.
    # TODO(synk): training-mode Dropout(p) (random mask + 1/(1-p) scale) is not applied.
    """
    ahat_p, x_p, w_stack, b_stack, (n, c_out) = prepare_gnn_inputs(
        x, edge_index, params)
    out_pad = gcn_fused_forward(ahat_p, x_p, w_stack, b_stack,
                                num_layers=len(params))
    return out_pad[:n, :c_out].astype(jnp.float32)


# -------------------------- pure-JAX references ---------------------------- #

def _fused_reference_bf16(ahat_p, x_p, w_stack, b_stack, num_layers):
    """Mirrors the kernel math (same casts / association) for a tight check."""
    h = x_p
    for li in range(num_layers):
        z = jnp.dot(h, w_stack[li], preferred_element_type=jnp.float32)
        hf = jnp.dot(ahat_p, z.astype(jnp.bfloat16),
                     preferred_element_type=jnp.float32)
        hf = hf + b_stack[li:li + 1, :]
        if li < num_layers - 1:
            h = jnp.maximum(hf, 0.0).astype(jnp.bfloat16)
        else:
            return hf.astype(jnp.bfloat16)


def _semantic_reference_f32(x, edge_index, params):
    """Full-f32 GCN forward (module semantics), for a loose sanity check."""
    ahat = gcn_normalized_adjacency(edge_index, x.shape[0])
    h = x
    num_layers = len(params)
    for li, (w, b) in enumerate(params):
        h = ahat @ (h @ w) + b[None, :]
        if li < num_layers - 1:
            h = jnp.maximum(h, 0.0)
    return h


# ------------------------------- main -------------------------------------- #

if __name__ == "__main__":
    N, C_IN, C_HIDDEN, C_OUT, NUM_LAYERS = 64, 16, 32, 8, 2

    key = jax.random.PRNGKey(0)
    kx, ke, kp = jax.random.split(key, 3)

    # Node features.
    x = jax.random.normal(kx, (N, C_IN), jnp.float32)

    # Deterministic random undirected-ish edge set (PyG [2, E] notation).
    E = 256
    src = jax.random.randint(ke, (E,), 0, N, dtype=jnp.int32)
    dst = jnp.roll(src, 7) ^ jnp.arange(E, dtype=jnp.int32) % N
    dst = jnp.clip(dst, 0, N - 1).astype(jnp.int32)
    edge_index = jnp.stack(
        [jnp.concatenate([src, dst]), jnp.concatenate([dst, src])], axis=0)

    params = init_gnn_params(kp, C_IN, C_HIDDEN, C_OUT, NUM_LAYERS)

    # One-time prep (hoisted out of the forward path), then the hot path.
    ahat_p, x_p, w_stack, b_stack, (n_real, c_out) = prepare_gnn_inputs(
        x, edge_index, params)
    out_pad = gcn_fused_forward(ahat_p, x_p, w_stack, b_stack,
                                num_layers=NUM_LAYERS)
    out_pad = jax.block_until_ready(out_pad)
    out = out_pad[:n_real, :c_out].astype(jnp.float32)
    assert out.shape == (N, C_OUT)

    # Convenience wrapper returns the same values.
    out_wrapper = jax.block_until_ready(gnn_model_forward(x, edge_index, params))
    assert jnp.allclose(out, out_wrapper, atol=1e-6, rtol=1e-6)

    # Tight check: identical bf16/f32-accumulate math in pure JAX.
    ref_tight = _fused_reference_bf16(
        ahat_p, x_p, w_stack, b_stack, NUM_LAYERS)[:n_real, :c_out]
    assert jnp.allclose(out, ref_tight.astype(jnp.float32), atol=1e-2, rtol=1e-2)

    # Loose check: full-f32 module semantics (bf16 MXU inputs + bf16 output
    # introduce <~1% relative rounding at these magnitudes).
    ref_f32 = _semantic_reference_f32(x, edge_index, params)
    assert jnp.allclose(out, ref_f32, atol=5e-2, rtol=5e-2)

    print("KERNEL_OK")
</pallas_src>

<mosaic_0001>
module attributes {stable_mosaic.version = 11 : i64} {
  func.func @_gcn_fused_kernel(%arg0: memref<128x128xbf16, #tpu.memory_space<vmem>>, %arg1: memref<128x128xbf16, #tpu.memory_space<vmem>>, %arg2: memref<2x128x128xbf16, #tpu.memory_space<vmem>>, %arg3: memref<2x128xf32, #tpu.memory_space<vmem>>, %arg4: memref<128x128xbf16, #tpu.memory_space<vmem>>) attributes {dimension_semantics = [], scalar_prefetch = 0 : i64, scratch_operands = 0 : i64, tpu.core_type = #tpu.core_type<tc>} {
    %c0 = arith.constant 0 : index
    %c0_0 = arith.constant 0 : index
    %0 = vector.load %arg0[%c0, %c0_0] : memref<128x128xbf16, #tpu.memory_space<vmem>>, vector<128x128xbf16>
    %c0_1 = arith.constant 0 : index
    %c0_2 = arith.constant 0 : index
    %1 = vector.load %arg1[%c0_1, %c0_2] : memref<128x128xbf16, #tpu.memory_space<vmem>>, vector<128x128xbf16>
    %c0_3 = arith.constant 0 : index
    %c0_4 = arith.constant 0 : index
    %c0_5 = arith.constant 0 : index
    %2 = vector.load %arg2[%c0_3, %c0_4, %c0_5] : memref<2x128x128xbf16, #tpu.memory_space<vmem>>, vector<1x128x128xbf16>
    %3 = vector.shape_cast %2 : vector<1x128x128xbf16> to vector<128x128xbf16>
    %cst = arith.constant dense<0.000000e+00> : vector<128x128xf32>
    %4 = tpu.matmul %1, %3, %cst {dimension_numbers = #tpu.dot_dimension_numbers<[1], [0], [0], [1], [0, 0, 1, 1], [], []>} : vector<128x128xbf16>, vector<128x128xbf16>, vector<128x128xf32> -> vector<128x128xf32>
    %5 = arith.truncf %4 : vector<128x128xf32> to vector<128x128xbf16>
    %cst_6 = arith.constant dense<0.000000e+00> : vector<128x128xf32>
    %6 = tpu.matmul %0, %5, %cst_6 {dimension_numbers = #tpu.dot_dimension_numbers<[1], [0], [0], [1], [0, 0, 1, 1], [], []>} : vector<128x128xbf16>, vector<128x128xbf16>, vector<128x128xf32> -> vector<128x128xf32>
    %c0_7 = arith.constant 0 : index
    %c0_8 = arith.constant 0 : index
    %7 = vector.load %arg3[%c0_7, %c0_8] : memref<2x128xf32, #tpu.memory_space<vmem>>, vector<1x128xf32>
    %8 = vector.broadcast %7 : vector<1x128xf32> to vector<128x128xf32>
    %9 = arith.addf %6, %8 : vector<128x128xf32>
    %cst_9 = arith.constant 0.000000e+00 : f32
    %10 = vector.broadcast %cst_9 : f32 to vector<128x128xf32>
    %11 = arith.maximumf %9, %10 : vector<128x128xf32>
    %12 = arith.truncf %11 : vector<128x128xf32> to vector<128x128xbf16>
    %c1 = arith.constant 1 : index
    %c0_10 = arith.constant 0 : index
    %c0_11 = arith.constant 0 : index
    %13 = vector.load %arg2[%c1, %c0_10, %c0_11] : memref<2x128x128xbf16, #tpu.memory_space<vmem>>, vector<1x128x128xbf16>
    %14 = vector.shape_cast %13 : vector<1x128x128xbf16> to vector<128x128xbf16>
    %cst_12 = arith.constant dense<0.000000e+00> : vector<128x128xf32>
    %15 = tpu.matmul %12, %14, %cst_12 {dimension_numbers = #tpu.dot_dimension_numbers<[1], [0], [0], [1], [0, 0, 1, 1], [], []>} : vector<128x128xbf16>, vector<128x128xbf16>, vector<128x128xf32> -> vector<128x128xf32>
    %16 = arith.truncf %15 : vector<128x128xf32> to vector<128x128xbf16>
    %cst_13 = arith.constant dense<0.000000e+00> : vector<128x128xf32>
    %17 = tpu.matmul %0, %16, %cst_13 {dimension_numbers = #tpu.dot_dimension_numbers<[1], [0], [0], [1], [0, 0, 1, 1], [], []>} : vector<128x128xbf16>, vector<128x128xbf16>, vector<128x128xf32> -> vector<128x128xf32>
    %c1_14 = arith.constant 1 : index
    %c0_15 = arith.constant 0 : index
    %18 = vector.load %arg3[%c1_14, %c0_15] : memref<2x128xf32, #tpu.memory_space<vmem>>, vector<1x128xf32>
    %19 = vector.broadcast %18 : vector<1x128xf32> to vector<128x128xf32>
    %20 = arith.addf %17, %19 : vector<128x128xf32>
    %21 = arith.truncf %20 : vector<128x128xf32> to vector<128x128xbf16>
    %c0_16 = arith.constant 0 : index
    %c0_17 = arith.constant 0 : index
    %22 = vector.load %arg4[%c0_16, %c0_17] : memref<128x128xbf16, #tpu.memory_space<vmem>>, vector<128x128xbf16>
    tpu.vector_store %arg4[%c0_16, %c0_17], %21 {strides = array<i32>} : memref<128x128xbf16, #tpu.memory_space<vmem>>, vector<128x128xbf16>,
    return
  }
}

</mosaic_0001>

<bundles_post_ra>
// kernel: gcn_fused_forward.1
= control target key start
LH: loop header
LB: loop body
LE: loop exit
PB: predicated region body
PF: predicated region fallthrough
CT: control target
= control target key end

     0   :  { %9 = vsyncpa [#allocation3], 0  ;;  %s1375_s0 = inlined_call_operand.hbm [shape: bf16[128,128], index: 0, kind: input, shape index: {}]   ;;  %s1376_s1 = inlined_call_operand.hbm [shape: bf16[128,128], index: 1, kind: input, shape index: {}]   ;;  %s1377_s2 = inlined_call_operand.hbm [shape: bf16[2,128,128], index: 2, kind: input, shape index: {}]   ;;  %s1378_s3 = inlined_call_operand.vmem [shape: f32[2,128], index: 3, kind: input, shape index: {}]   ;;  %s1379_s4 = inlined_call_operand.hbm [shape: bf16[128,128], index: 4, kind: output, shape index: {}]  }
   0x1   :  { %10 = vsyncpa [#allocation6], 0 }
   0x2   :  { %11 = vsyncpa [#allocation4], 0  ;;  %s1282_s15 = smov [#allocation5]   ;;  %s1283_s17 = smov [#allocation2]  }
   0x3   :  { %s29_s16 = sshll.u32 %s1282_s15, 4  ;;  %s17_s18 = sshll.u32 %s1283_s17, 4  ;;  %s30_s16 = int_to_ptr.vmem [resolvable:$true] %s29_s16  ;;  %s18_s18 = int_to_ptr.vmem [resolvable:$true] %s17_s18 }
   0x4   :  { %s1204_s19 = scalar_lea.vmem %s30_s16, 1024  ;;  %p1209_p1 = scmp.lt.s32.totalorder %s30_s16, %s30_s16 }
   0x5   :  { %p1205_p0 = scmp.ne.s32.totalorder %s30_s16, %s1204_s19  ;;  %p1210_p2 = scmp.lt.s32.totalorder %s1204_s19, %s1204_s19 }
   0x7   :  { %p1211_p3 = por %p1210_p2, %p1209_p1 }
   0x9   :  { %p1212_p4 = pnand %p1211_p3, %p1205_p0 }
   0xb   :  { %1215 = shalt.err (!%p1212_p4)
}
   0xc   :  { %s1284_s20 = smov 64   ;;  %s1285_s21 = smov 4  }
   0xd   :  { %35 = dma.hbm_to_vmem [thread:$0]  %s1376_s1, 1024, %s30_s16, [#allocation6], %s1284_s20, %s1284_s20, %s1285_s21  }
   0xe   :  { %s1224_s24 = scalar_lea.vmem %s18_s18, 1024  ;;  %p1229_p6 = scmp.lt.s32.totalorder %s18_s18, %s18_s18 }
   0xf   :  { %p1225_p5 = scmp.ne.s32.totalorder %s18_s18, %s1224_s24  ;;  %p1230_p7 = scmp.lt.s32.totalorder %s1224_s24, %s1224_s24 }
  0x11   :  { %p1231_p8 = por %p1230_p7, %p1229_p6 }
  0x13   :  { %p1232_p9 = pnand %p1231_p8, %p1225_p5 }
  0x15   :  { %1235 = shalt.err (!%p1232_p9)
}
  0x16   :  { %23 = dma.hbm_to_vmem [thread:$0]  %s1375_s0, 1024, %s18_s18, [#allocation3], %s1284_s20, %s1284_s20, %s1285_s21  }
  0x17   :  { %s1286_s27 = smov [#allocation7]  }
  0x18   :  { %s41_s28 = sshll.u32 %s1286_s27, 4  ;;  %s42_s28 = int_to_ptr.vmem [resolvable:$true] %s41_s28 }
  0x19   :  { %s1244_s29 = scalar_lea.vmem %s42_s28, 2048  ;;  %p1249_p11 = scmp.lt.s32.totalorder %s42_s28, %s42_s28 }
  0x1a   :  { %p1245_p10 = scmp.ne.s32.totalorder %s42_s28, %s1244_s29  ;;  %p1250_p12 = scmp.lt.s32.totalorder %s1244_s29, %s1244_s29 }
  0x1c   :  { %p1251_p13 = por %p1250_p12, %p1249_p11 }
  0x1e   :  { %p1252_p0 = pnand %p1251_p13, %p1245_p10 }
  0x20   :  { %1255 = shalt.err (!%p1252_p0)
}
  0x21   :  { %47 = dma.hbm_to_vmem [thread:$0]  %s1377_s2, 2048, %s42_s28, [#allocation6], %s1284_s20, %s1284_s20, %s1285_s21  }
  0x22   :  { %1276 = dma.done.wait [#allocation3], 1024  }
  0x23   :  { %1277 = vsyncadd [#allocation3], 4294966272 }
  0x24   :  { %1278 = dma.done.wait [#allocation6], 3072  }
  0x25   :  { %1279 = vsyncadd [#allocation6], 4294964224  ;;  %v1164_v0 = vld [vmem:[#allocation7 + $0x38] sm:$0xff]   ;;  %v1165_v1 = vld [vmem:[#allocation7 + $0x30] sm:$0xff]  }
  0x26   :  { %1030 = vmatprep.subr.bf16.mxu0 %v1164_v0  ;;  %v1166_v2 = vld [vmem:[#allocation7 + $0x28] sm:$0xff]   ;;  %v1167_v3 = vld [vmem:[#allocation7 + $0x20] sm:$0xff]   ;;  %v1168_v5 = vld [vmem:[#allocation7 + $0x18] sm:$0xff]  }
  0x27   :  { %1031 = vmatpush3.bf16.msra.mxu0 %v1164_v0  ;;  %v1172_v4 = vld [vmem:[#allocation5] sm:$0xff]   ;;  %v1169_v6 = vld [vmem:[#allocation7 + $0x10] sm:$0xff]   ;;  %v1170_v7 = vld [vmem:[#allocation7 + $0x8] sm:$0xff]  }
  0x28   :  { %1032 = vmatprep.subr.bf16.mxu0 %v1165_v1  ;;  %1046 = vmatprep.mubr.bf16.mxu0 %v1172_v4  ;;  %v1171_v8 = vld [vmem:[#allocation7] sm:$0xff]   ;;  %v1173_v9 = vld [vmem:[#allocation5 + $0x8] sm:$0xff]   ;;  %v1174_v10 = vld [vmem:[#allocation5 + $0x10] sm:$0xff]  }
  0x29   :  { %v1175_v11 = vld [vmem:[#allocation5 + $0x18] sm:$0xff]   ;;  %v1176_v12 = vld [vmem:[#allocation5 + $0x20] sm:$0xff]   ;;  %v1177_v13 = vld [vmem:[#allocation5 + $0x28] sm:$0xff]  }
  0x2a   :  { %v1178_v14 = vld [vmem:[#allocation5 + $0x30] sm:$0xff]   ;;  %v1179_v15 = vld [vmem:[#allocation5 + $0x38] sm:$0xff]   ;;  %v1331_v16 = vld [vmem:[#allocation2] sm:$0xff]  }
  0x2b   :  { %1033 = vmatpush3.bf16.msra.mxu0 %v1165_v1  ;;  %1078 = vmatprep.mubr.bf16.mxu1 %v1331_v16  ;;  %v1188_v17 = vld [vmem:[#allocation7 + $0x78] sm:$0xff]   ;;  %v1189_v18 = vld [vmem:[#allocation7 + $0x70] sm:$0xff]   ;;  %v1190_v19 = vld [vmem:[#allocation7 + $0x68] sm:$0xff]  }
  0x2c   :  { %1034 = vmatprep.subr.bf16.mxu0 %v1166_v2  ;;  %v1191_v20 = vld [vmem:[#allocation7 + $0x60] sm:$0xff]   ;;  %v1192_v21 = vld [vmem:[#allocation7 + $0x58] sm:$0xff]   ;;  %v1334_v46 = vld [vmem:[#allocation2 + $0x8] sm:$0xff]  }
  0x2d   :  { %v1336_v47 = vld [vmem:[#allocation2 + $0x10] sm:$0xff]   ;;  %v1340_v48 = vld [vmem:[#allocation2 + $0x18] sm:$0xff]   ;;  %v1342_v49 = vld [vmem:[#allocation2 + $0x20] sm:$0xff]  }
  0x2e   :  { %v1346_v50 = vld [vmem:[#allocation2 + $0x28] sm:$0xff]   ;;  %v1348_v51 = vld [vmem:[#allocation2 + $0x30] sm:$0xff]   ;;  %v1352_v52 = vld [vmem:[#allocation2 + $0x38] sm:$0xff]  }
  0x2f   :  { %1035 = vmatpush3.bf16.msra.mxu0 %v1166_v2  ;;  %v1193_v53 = vld [vmem:[#allocation7 + $0x50] sm:$0xff]   ;;  %v1194_v54 = vld [vmem:[#allocation7 + $0x48] sm:$0xff]   ;;  %v1195_v55 = vld [vmem:[#allocation7 + $0x40] sm:$0xff]  }
  0x30   :  { %1036 = vmatprep.subr.bf16.mxu0 %v1167_v3  ;;  %v869_v58 = vld [vmem:[%s1378_s3] ss:$0 sm:$0xff] }
  0x33   :  { %1037 = vmatpush3.bf16.msra.mxu0 %v1167_v3 }
  0x34   :  { %1038 = vmatprep.subr.bf16.mxu0 %v1168_v5 }
  0x37   :  { %1039 = vmatpush3.bf16.msra.mxu0 %v1168_v5 }
  0x38   :  { %1040 = vmatprep.subr.bf16.mxu0 %v1169_v6 }
  0x3b   :  { %1041 = vmatpush3.bf16.msra.mxu0 %v1169_v6 }
  0x3c   :  { %1042 = vmatprep.subr.bf16.mxu0 %v1170_v7 }
  0x3f   :  { %1043 = vmatpush3.bf16.msra.mxu0 %v1170_v7 }
  0x40   :  { %1044 = vmatprep.subr.bf16.mxu0 %v1171_v8 }
  0x43   :  { %1045 = vmatpush3.bf16.msra.mxu0 %v1171_v8 }
  0x44   :  { %1094 = vmatprep.subr.bf16.mxu0 %v1188_v17 }
  0x46   :  { %1047 = vmatmul.mubr.bf16.vlgmr.msra.gmra.mxu0 %v1173_v9 }
  0x47   :  { %1050 = vmatprep.mubr.bf16.mxu0 %v1174_v10  ;;  %1095 = vmatpush3.bf16.msra.mxu0 %v1188_v17 }
  0x48   :  { %1096 = vmatprep.subr.bf16.mxu0 %v1189_v18 }
  0x4b   :  { %1097 = vmatpush3.bf16.msra.mxu0 %v1189_v18 }
  0x4c   :  { %1098 = vmatprep.subr.bf16.mxu0 %v1190_v19 }
  0x4e   :  { %1051 = vmatmul.mubr.bf16.gmra.mxu0 %v1175_v11 }
  0x4f   :  { %1054 = vmatprep.mubr.bf16.mxu0 %v1176_v12  ;;  %1099 = vmatpush3.bf16.msra.mxu0 %v1190_v19 }
  0x50   :  { %1100 = vmatprep.subr.bf16.mxu0 %v1191_v20 }
  0x53   :  { %1101 = vmatpush3.bf16.msra.mxu0 %v1191_v20 }
  0x54   :  { %1102 = vmatprep.subr.bf16.mxu0 %v1192_v21 }
  0x56   :  { %1055 = vmatmul.mubr.bf16.gmra.mxu0 %v1177_v13 }
  0x57   :  { %1058 = vmatprep.mubr.bf16.mxu0 %v1178_v14  ;;  %1103 = vmatpush3.bf16.msra.mxu0 %v1192_v21 }
  0x58   :  { %1104 = vmatprep.subr.bf16.mxu0 %v1193_v53 }
  0x5b   :  { %1105 = vmatpush3.bf16.msra.mxu0 %v1193_v53 }
  0x5c   :  { %1106 = vmatprep.subr.bf16.mxu0 %v1194_v54 }
  0x5e   :  { %1059 = vmatmul.mubr.bf16.gmra.mxu0 %v1179_v15 }
  0x5f   :  { %1107 = vmatpush3.bf16.msra.mxu0 %v1194_v54 }
  0x60   :  { %1108 = vmatprep.subr.bf16.mxu0 %v1195_v55 }
  0x63   :  { %1109 = vmatpush3.bf16.msra.mxu0 %v1195_v55 }
 0x106   :  { %v1048_v22 = vpop.f32.mrf.mxu0 }
 0x108   :  { %v238_v23 = vpop.f32.mrf.mxu0 }
 0x10a   :  { %v1049_v24 = vpop.f32.mrf.mxu0 }
 0x10b   :  { %v302_v44 = vpack.c.bf16 %v1049_v24, %v1048_v22 }
 0x10c   :  { %v241_v25 = vpop.f32.mrf.mxu0 }
 0x10d   :  { %v301_v45 = vpack.c.bf16 %v241_v25, %v238_v23 }
 0x10e   :  { %v1052_v26 = vpop.f32.mrf.mxu0 }
 0x110   :  { %v254_v27 = vpop.f32.mrf.mxu0 }
 0x112   :  { %v1053_v28 = vpop.f32.mrf.mxu0 }
 0x113   :  { %v304_v42 = vpack.c.bf16 %v1053_v28, %v1052_v26 }
 0x114   :  { %v257_v29 = vpop.f32.mrf.mxu0 }
 0x115   :  { %v303_v43 = vpack.c.bf16 %v257_v29, %v254_v27 }
 0x116   :  { %v1056_v30 = vpop.f32.mrf.mxu0 }
 0x118   :  { %v270_v31 = vpop.f32.mrf.mxu0 }
 0x11a   :  { %v1057_v32 = vpop.f32.mrf.mxu0 }
 0x11b   :  { %v306_v40 = vpack.c.bf16 %v1057_v32, %v1056_v30 }
 0x11c   :  { %v273_v33 = vpop.f32.mrf.mxu0 }
 0x11d   :  { %v305_v41 = vpack.c.bf16 %v273_v33, %v270_v31 }
 0x11e   :  { %v1060_v34 = vpop.f32.mrf.mxu0 }
 0x120   :  { %v286_v35 = vpop.f32.mrf.mxu0 }
 0x122   :  { %v1061_v36 = vpop.f32.mrf.mxu0 }
 0x123   :  { %v308_v37 = vpack.c.bf16 %v1061_v36, %v1060_v34 }
 0x124   :  { %v289_v38 = vpop.f32.mrf.mxu0 }
 0x125   :  { %v307_v39 = vpack.c.bf16 %v289_v38, %v286_v35  ;;  %1062 = vmatprep.subr.bf16.mxu1 %v308_v37 }
 0x126   :  { %1063 = vmatpush3.bf16.msra.mxu1 %v308_v37 }
 0x127   :  { %1064 = vmatprep.subr.bf16.mxu1 %v307_v39 }
 0x12a   :  { %1065 = vmatpush3.bf16.msra.mxu1 %v307_v39 }
 0x12b   :  { %1066 = vmatprep.subr.bf16.mxu1 %v306_v40 }
 0x12e   :  { %1067 = vmatpush3.bf16.msra.mxu1 %v306_v40 }
 0x12f   :  { %1068 = vmatprep.subr.bf16.mxu1 %v305_v41 }
 0x132   :  { %1069 = vmatpush3.bf16.msra.mxu1 %v305_v41 }
 0x133   :  { %1070 = vmatprep.subr.bf16.mxu1 %v304_v42 }
 0x136   :  { %1071 = vmatpush3.bf16.msra.mxu1 %v304_v42 }
 0x137   :  { %1072 = vmatprep.subr.bf16.mxu1 %v303_v43 }
 0x13a   :  { %1073 = vmatpush3.bf16.msra.mxu1 %v303_v43 }
 0x13b   :  { %1074 = vmatprep.subr.bf16.mxu1 %v302_v44 }
 0x13e   :  { %1075 = vmatpush3.bf16.msra.mxu1 %v302_v44 }
 0x13f   :  { %1076 = vmatprep.subr.bf16.mxu1 %v301_v45 }
 0x142   :  { %1077 = vmatpush3.bf16.msra.mxu1 %v301_v45 }
 0x145   :  { %1079 = vmatmul.mubr.bf16.vlgmr.msra.gmra.mxu1 %v1334_v46 }
 0x146   :  { %1082 = vmatprep.mubr.bf16.mxu1 %v1336_v47 }
 0x14d   :  { %1083 = vmatmul.mubr.bf16.gmra.mxu1 %v1340_v48 }
 0x14e   :  { %1086 = vmatprep.mubr.bf16.mxu1 %v1342_v49 }
 0x155   :  { %1087 = vmatmul.mubr.bf16.gmra.mxu1 %v1346_v50 }
 0x156   :  { %1090 = vmatprep.mubr.bf16.mxu1 %v1348_v51 }
 0x15d   :  { %1091 = vmatmul.mubr.bf16.gmra.mxu1 %v1352_v52 }
 0x15e   :  { %1142 = vmatprep.mubr.bf16.mxu1 %v1331_v16 }
 0x205   :  { %v1080_v56 = vpop.f32.mrf.mxu1 }
 0x206   :  { %v405_v62 = vadd.f32 %v1080_v56, %v869_v58 }
 0x207   :  { %v396_v57 = vpop.f32.mrf.mxu1 }
 0x208   :  { %v397_v60 = vadd.f32 %v869_v58, %v396_v57  ;;  %v461_v5 = vmax.f32 %v405_v62, 0.0 }
 0x209   :  { %v1081_v59 = vpop.f32.mrf.mxu1 }
 0x20a   :  { %v408_v61 = vadd.f32 %v1081_v59, %v869_v58  ;;  %v459_v3 = vmax.f32 %v397_v60, 0.0 }
 0x20b   :  { %v399_v63 = vpop.f32.mrf.mxu1 }
 0x20c   :  { %v400_v0 = vadd.f32 %v869_v58, %v399_v63  ;;  %v462_v1 = vmax.f32 %v408_v61, 0.0 }
 0x20d   :  { %v1084_v2 = vpop.f32.mrf.mxu1 }
 0x20e   :  { %v460_v4 = vmax.f32 %v400_v0, 0.0  ;;  %v476_v8 = vpack.c.bf16 %v462_v1, %v461_v5  ;;  %v421_v12 = vadd.f32 %v1084_v2, %v869_v58 }
 0x20f   :  { %v412_v6 = vpop.f32.mrf.mxu1 }
 0x210   :  { %v475_v7 = vpack.c.bf16 %v460_v4, %v459_v3  ;;  %v413_v10 = vadd.f32 %v869_v58, %v412_v6  ;;  %v465_v19 = vmax.f32 %v421_v12, 0.0 }
 0x211   :  { %v1085_v9 = vpop.f32.mrf.mxu1 }
 0x212   :  { %v424_v11 = vadd.f32 %v1085_v9, %v869_v58  ;;  %1110 = vmatprep.mubr.bf16.mxu0 %v475_v7  ;;  %v463_v17 = vmax.f32 %v413_v10, 0.0 }
 0x213   :  { %v415_v13 = vpop.f32.mrf.mxu1  ;;  %1111 = vmatmul.mubr.bf16.vlgmr.msra.gmra.mxu0 %v476_v8 }
 0x214   :  { %v416_v14 = vadd.f32 %v869_v58, %v415_v13  ;;  %v466_v15 = vmax.f32 %v424_v11, 0.0 }
 0x215   :  { %v1088_v16 = vpop.f32.mrf.mxu1 }
 0x216   :  { %v464_v18 = vmax.f32 %v416_v14, 0.0  ;;  %v478_v22 = vpack.c.bf16 %v466_v15, %v465_v19  ;;  %v437_v26 = vadd.f32 %v1088_v16, %v869_v58 }
 0x217   :  { %v428_v20 = vpop.f32.mrf.mxu1 }
 0x218   :  { %v477_v21 = vpack.c.bf16 %v464_v18, %v463_v17  ;;  %v429_v24 = vadd.f32 %v869_v58, %v428_v20  ;;  %v469_v33 = vmax.f32 %v437_v26, 0.0  ;;  %v886_v17 = vld [vmem:[%s1378_s3 + $0x1] ss:$0 sm:$0xff]  ;;  %s1287_s3 = smov [#allocation8]  }
 0x219   :  { %v1089_v23 = vpop.f32.mrf.mxu1  ;;  %s840_s7 = sshll.u32 %s1287_s3, 4  ;;  %s841_s7 = int_to_ptr.vmem [resolvable:$true] %s840_s7 }
 0x21a   :  { %v440_v25 = vadd.f32 %v1089_v23, %v869_v58  ;;  %1114 = vmatprep.mubr.bf16.mxu0 %v477_v21  ;;  %v467_v31 = vmax.f32 %v429_v24, 0.0  ;;  %s1256_s8 = scalar_lea.vmem %s841_s7, 1024  ;;  %p1261_p2 = scmp.lt.s32.totalorder %s841_s7, %s841_s7 }
 0x21b   :  { %v431_v27 = vpop.f32.mrf.mxu1  ;;  %1115 = vmatmul.mubr.bf16.gmra.mxu0 %v478_v22  ;;  %p1257_p1 = scmp.ne.s32.totalorder %s841_s7, %s1256_s8  ;;  %p1262_p3 = scmp.lt.s32.totalorder %s1256_s8, %s1256_s8 }
 0x21c   :  { %v432_v28 = vadd.f32 %v869_v58, %v431_v27  ;;  %v470_v29 = vmax.f32 %v440_v25, 0.0 }
 0x21d   :  { %v1092_v30 = vpop.f32.mrf.mxu1  ;;  %p1263_p4 = por %p1262_p3, %p1261_p2 }
 0x21e   :  { %v468_v32 = vmax.f32 %v432_v28, 0.0  ;;  %v480_v36 = vpack.c.bf16 %v470_v29, %v469_v33  ;;  %v453_v40 = vadd.f32 %v1092_v30, %v869_v58 }
 0x21f   :  { %v444_v34 = vpop.f32.mrf.mxu1  ;;  %p1264_p5 = pnand %p1263_p4, %p1257_p1 }
 0x220   :  { %v479_v35 = vpack.c.bf16 %v468_v32, %v467_v31  ;;  %v445_v38 = vadd.f32 %v869_v58, %v444_v34  ;;  %v473_v53 = vmax.f32 %v453_v40, 0.0 }
 0x221   :  { %v1093_v37 = vpop.f32.mrf.mxu1 }
 0x222   :  { %v456_v39 = vadd.f32 %v1093_v37, %v869_v58  ;;  %1118 = vmatprep.mubr.bf16.mxu0 %v479_v35  ;;  %v471_v44 = vmax.f32 %v445_v38, 0.0 }
 0x223   :  { %v447_v41 = vpop.f32.mrf.mxu1  ;;  %1119 = vmatmul.mubr.bf16.gmra.mxu0 %v480_v36 }
 0x224   :  { %v448_v42 = vadd.f32 %v869_v58, %v447_v41  ;;  %v474_v43 = vmax.f32 %v456_v39, 0.0 }
 0x226   :  { %v472_v45 = vmax.f32 %v448_v42, 0.0  ;;  %v482_v55 = vpack.c.bf16 %v474_v43, %v473_v53 }
 0x228   :  { %v481_v54 = vpack.c.bf16 %v472_v45, %v471_v44 }
 0x22a   :  { %1122 = vmatprep.mubr.bf16.mxu0 %v481_v54 }
 0x22b   :  { %1123 = vmatmul.mubr.bf16.gmra.mxu0 %v482_v55 }
 0x2d3   :  { %v1112_v56 = vpop.f32.mrf.mxu0 }
 0x2d5   :  { %v582_v57 = vpop.f32.mrf.mxu0 }
 0x2d7   :  { %v1113_v59 = vpop.f32.mrf.mxu0 }
 0x2d8   :  { %v646_v14 = vpack.c.bf16 %v1113_v59, %v1112_v56 }
 0x2d9   :  { %v585_v60 = vpop.f32.mrf.mxu0 }
 0x2da   :  { %v645_v15 = vpack.c.bf16 %v585_v60, %v582_v57 }
 0x2db   :  { %v1116_v61 = vpop.f32.mrf.mxu0 }
 0x2dd   :  { %v598_v62 = vpop.f32.mrf.mxu0 }
 0x2df   :  { %v1117_v63 = vpop.f32.mrf.mxu0 }
 0x2e0   :  { %v648_v12 = vpack.c.bf16 %v1117_v63, %v1116_v61 }
 0x2e1   :  { %v601_v0 = vpop.f32.mrf.mxu0 }
 0x2e2   :  { %v647_v13 = vpack.c.bf16 %v601_v0, %v598_v62 }
 0x2e3   :  { %v1120_v1 = vpop.f32.mrf.mxu0 }
 0x2e5   :  { %v614_v2 = vpop.f32.mrf.mxu0 }
 0x2e7   :  { %v1121_v3 = vpop.f32.mrf.mxu0 }
 0x2e8   :  { %v650_v10 = vpack.c.bf16 %v1121_v3, %v1120_v1 }
 0x2e9   :  { %v617_v58 = vpop.f32.mrf.mxu0 }
 0x2ea   :  { %v649_v11 = vpack.c.bf16 %v617_v58, %v614_v2 }
 0x2eb   :  { %v1124_v4 = vpop.f32.mrf.mxu0 }
 0x2ed   :  { %v630_v5 = vpop.f32.mrf.mxu0 }
 0x2ef   :  { %v1125_v6 = vpop.f32.mrf.mxu0 }
 0x2f0   :  { %v652_v7 = vpack.c.bf16 %v1125_v6, %v1124_v4 }
 0x2f1   :  { %v633_v8 = vpop.f32.mrf.mxu0 }
 0x2f2   :  { %v651_v9 = vpack.c.bf16 %v633_v8, %v630_v5  ;;  %1126 = vmatprep.subr.bf16.mxu1 %v652_v7 }
 0x2f3   :  { %1127 = vmatpush3.bf16.msra.mxu1 %v652_v7 }
 0x2f4   :  { %1128 = vmatprep.subr.bf16.mxu1 %v651_v9 }
 0x2f7   :  { %1129 = vmatpush3.bf16.msra.mxu1 %v651_v9 }
 0x2f8   :  { %1130 = vmatprep.subr.bf16.mxu1 %v650_v10 }
 0x2fb   :  { %1131 = vmatpush3.bf16.msra.mxu1 %v650_v10 }
 0x2fc   :  { %1132 = vmatprep.subr.bf16.mxu1 %v649_v11 }
 0x2ff   :  { %1133 = vmatpush3.bf16.msra.mxu1 %v649_v11 }
 0x300   :  { %1134 = vmatprep.subr.bf16.mxu1 %v648_v12 }
 0x303   :  { %1135 = vmatpush3.bf16.msra.mxu1 %v648_v12 }
 0x304   :  { %1136 = vmatprep.subr.bf16.mxu1 %v647_v13 }
 0x307   :  { %1137 = vmatpush3.bf16.msra.mxu1 %v647_v13 }
 0x308   :  { %1138 = vmatprep.subr.bf16.mxu1 %v646_v14 }
 0x30b   :  { %1139 = vmatpush3.bf16.msra.mxu1 %v646_v14 }
 0x30c   :  { %1140 = vmatprep.subr.bf16.mxu1 %v645_v15 }
 0x30f   :  { %1141 = vmatpush3.bf16.msra.mxu1 %v645_v15 }
 0x312   :  { %1143 = vmatmul.mubr.bf16.vlgmr.msra.gmra.mxu1 %v1334_v46 }
 0x313   :  { %1146 = vmatprep.mubr.bf16.mxu1 %v1336_v47 }
 0x31a   :  { %1147 = vmatmul.mubr.bf16.gmra.mxu1 %v1340_v48 }
 0x31b   :  { %1150 = vmatprep.mubr.bf16.mxu1 %v1342_v49 }
 0x322   :  { %1151 = vmatmul.mubr.bf16.gmra.mxu1 %v1346_v50 }
 0x323   :  { %1154 = vmatprep.mubr.bf16.mxu1 %v1348_v51 }
 0x32a   :  { %1155 = vmatmul.mubr.bf16.gmra.mxu1 %v1352_v52 }
 0x3d2   :  { %v1144_v16 = vpop.f32.mrf.mxu1 }
 0x3d3   :  { %v701_v46 = vadd.f32 %v1144_v16, %v886_v17 }
 0x3d4   :  { %v692_v18 = vpop.f32.mrf.mxu1 }
 0x3d5   :  { %v693_v21 = vadd.f32 %v886_v17, %v692_v18 }
 0x3d6   :  { %v1145_v19 = vpop.f32.mrf.mxu1 }
 0x3d7   :  { %v704_v20 = vadd.f32 %v1145_v19, %v886_v17 }
 0x3d8   :  { %v695_v47 = vpop.f32.mrf.mxu1 }
 0x3d9   :  { %v927_v48 = vpack.c.bf16 %v704_v20, %v701_v46  ;;  %v696_v22 = vadd.f32 %v886_v17, %v695_v47 }
 0x3da   :  { %v1148_v49 = vpop.f32.mrf.mxu1 }
 0x3db   :  { %959 = vst [vmem:[#allocation8 + $0x8] sm:$0xff] %v927_v48   ;;  %v922_v50 = vpack.c.bf16 %v696_v22, %v693_v21  ;;  %v717_v52 = vadd.f32 %v1148_v49, %v886_v17 }
 0x3dc   :  { %v708_v23 = vpop.f32.mrf.mxu1 }
 0x3dd   :  { %923 = vst [vmem:[#allocation8] sm:$0xff] %v922_v50   ;;  %v709_v26 = vadd.f32 %v886_v17, %v708_v23 }
 0x3de   :  { %v1149_v51 = vpop.f32.mrf.mxu1 }
 0x3df   :  { %v720_v24 = vadd.f32 %v1149_v51, %v886_v17 }
 0x3e0   :  { %v711_v25 = vpop.f32.mrf.mxu1 }
 0x3e1   :  { %v937_v27 = vpack.c.bf16 %v720_v24, %v717_v52  ;;  %v712_v28 = vadd.f32 %v886_v17, %v711_v25 }
 0x3e2   :  { %v1152_v29 = vpop.f32.mrf.mxu1 }
 0x3e3   :  { %961 = vst [vmem:[#allocation8 + $0x18] sm:$0xff] %v937_v27   ;;  %v932_v30 = vpack.c.bf16 %v712_v28, %v709_v26  ;;  %v733_v33 = vadd.f32 %v1152_v29, %v886_v17 }
 0x3e4   :  { %v724_v31 = vpop.f32.mrf.mxu1 }
 0x3e5   :  { %960 = vst [vmem:[#allocation8 + $0x10] sm:$0xff] %v932_v30   ;;  %v725_v36 = vadd.f32 %v886_v17, %v724_v31 }
 0x3e6   :  { %v1153_v32 = vpop.f32.mrf.mxu1 }
 0x3e7   :  { %v736_v34 = vadd.f32 %v1153_v32, %v886_v17 }
 0x3e8   :  { %v727_v35 = vpop.f32.mrf.mxu1 }
 0x3e9   :  { %v947_v37 = vpack.c.bf16 %v736_v34, %v733_v33  ;;  %v728_v38 = vadd.f32 %v886_v17, %v727_v35 }
 0x3ea   :  { %v1156_v39 = vpop.f32.mrf.mxu1 }
 0x3eb   :  { %963 = vst [vmem:[#allocation8 + $0x28] sm:$0xff] %v947_v37   ;;  %v942_v40 = vpack.c.bf16 %v728_v38, %v725_v36  ;;  %v749_v43 = vadd.f32 %v1156_v39, %v886_v17 }
 0x3ec   :  { %v740_v41 = vpop.f32.mrf.mxu1 }
 0x3ed   :  { %962 = vst [vmem:[#allocation8 + $0x20] sm:$0xff] %v942_v40   ;;  %v741_v53 = vadd.f32 %v886_v17, %v740_v41 }
 0x3ee   :  { %v1157_v42 = vpop.f32.mrf.mxu1 }
 0x3ef   :  { %v752_v44 = vadd.f32 %v1157_v42, %v886_v17 }
 0x3f0   :  { %v743_v45 = vpop.f32.mrf.mxu1 }
 0x3f1   :  { %v957_v54 = vpack.c.bf16 %v752_v44, %v749_v43  ;;  %v744_v55 = vadd.f32 %v886_v17, %v743_v45 }
 0x3f3   :  { %965 = vst [vmem:[#allocation8 + $0x38] sm:$0xff] %v957_v54   ;;  %v952_v56 = vpack.c.bf16 %v744_v55, %v741_v53 }
 0x3f5   :  { %964 = vst [vmem:[#allocation8 + $0x30] sm:$0xff] %v952_v56  }
 0x3f6   :  { %1267 = shalt.err (!%p1264_p5)
}
 0x3f7   :  { %846 = dma.vmem_to_hbm [thread:$0]  %s841_s7, 1024, %s1379_s4, [#allocation4], %s1284_s20, %s1284_s20, %s1285_s21  }
 0x3f8   :  { %1280 = dma.done.wait [#allocation4], 1024  }
 0x3f9   :  { %1281 = vsyncadd [#allocation4], 4294966272 }
 0x3fa   :  { %850 = vsyncpa [#allocation3], 1 }
 0x3fb   :  { %851 = vsyncpa [#allocation6], 1 }
 0x3fc   :  { %852 = vsyncpa [#allocation4], 1 }

</bundles_post_ra>
